<compile_context>
chip_gen: v7x
topology: tpu7x:2x2x1
jax: 0.10.0
libtpu: 0.0.40
codegen_flags: <defaults>
</compile_context>

<pallas_src>
import jax
import jax.numpy as jnp
from jax.experimental import pallas as pl
from jax.experimental.pallas import tpu as pltpu


# Double-buffered VMEM slab budget and scoped limit (bytes). Chosen so the
# per-step working set + Mosaic scratch fit comfortably inside v7x's 64 MiB
# physical VMEM; v5e/v6e (128 MiB) have ample headroom.
_VMEM_SLAB_BUDGET = 28 * 1024 * 1024
_VMEM_LIMIT_BYTES = 40 * 1024 * 1024


def _round_up(x, m):
    return (x + m - 1) // m * m


def _slab_bytes(tm, tn, f):
    """Estimated double-buffered VMEM slab usage for one grid step."""
    return (2 * 2 * tm * f * 4        # x1, x2 tiles (f32, 2 buffers each)
            + 2 * 2 * f * tn * 2      # w1, w2 tiles (bf16, 2 buffers each)
            + 2 * 2 * 1 * tn * 4      # b1, b2 tiles (f32)
            + 2 * 2 * tm * tn * 4     # y1, y2 output tiles (f32, 2 buffers each)
            + 2 * tm * 128 * 4)       # fused-similarity partial output


def _select_tiles(batch, f, d):
    """Pick (tm, tn) = (batch tile, output-dim tile) under the VMEM budget."""
    # Output-dim tile: keep it a multiple of 128 (lane-dense); only tile when D
    # is large enough that tiling actually bounds the working set.
    if d % 128 == 0 and d > 512:
        tn = next(t for t in (512, 384, 256, 128) if d % t == 0)
    else:
        tn = d  # full extent (required when D is not a multiple of 128)

    # Batch tile: as large as the budget allows. Amortizes the ~0.35us per-step
    # overhead and keeps the ceil(B/tm) weight re-stream (tiled-D case) small.
    tm = 1024
    while tm > 128 and _slab_bytes(tm, tn, f) > _VMEM_SLAB_BUDGET:
        tm //= 2

    if batch <= tm:
        tm = max(batch, 1)            # full-extent block: no padding, no slicing
    else:
        # Prefer a tile that divides B to avoid the pad + output-slice copies.
        for cand in (tm, tm // 2, tm // 4):
            if cand >= 128 and batch % cand == 0:
                tm = cand
                break

    # v7x has 2 TensorCores: when the grid would collapse to (1, 1), split the
    # output dim (if cleanly possible) so both cores get a 'parallel' tile.
    if batch <= tm and tn == d and d % 256 == 0:
        tn = d // 2
    return tm, tn


def _proj_kernel(x1_ref, x2_ref, w1_ref, b1_ref, w2_ref, b2_ref,
                 y1_ref, y2_ref, *sim_ref):
    """Two Linear(768->D) projections + optional fused lane-dense 'ip' partial."""
    # Activations cast to bf16 in VMEM (full-rate MXU path, no HBM round trip);
    # weights already arrive bf16. Accumulation and bias add stay f32.
    x1 = x1_ref[...].astype(jnp.bfloat16)
    x2 = x2_ref[...].astype(jnp.bfloat16)
    y1 = jnp.dot(x1, w1_ref[...], preferred_element_type=jnp.float32) + b1_ref[...]
    y2 = jnp.dot(x2, w2_ref[...], preferred_element_type=jnp.float32) + b2_ref[...]
    y1_ref[...] = y1.astype(y1_ref.dtype)
    y2_ref[...] = y2.astype(y2_ref.dtype)

    if sim_ref:
        # Fused 'ip' partial: fold the tn lanes into 128-lane groups with static,
        # lane-aligned slices (cheap vreg adds on the VPU, which has slack here).
        (s_ref,) = sim_ref
        p = y1 * y2
        tn = p.shape[-1]
        acc = p[:, 0:128]
        for c in range(1, tn // 128):
            acc = acc + p[:, c * 128:(c + 1) * 128]
        s_ref[...] = acc.astype(s_ref.dtype)


def prepare_params(w1, b1, w2, b2):
    """One-time (call OUTSIDE jit) conversion of projection weights to bf16.

    Hoists the f32->bf16 cast out of the per-call path: the kernel then streams
    2 bytes/weight-element from HBM instead of ~8 (read f32 + write/read bf16).
    Biases stay f32 (added after the f32 accumulation).
    """
    return (jnp.asarray(w1, jnp.bfloat16), jnp.asarray(b1, jnp.float32),
            jnp.asarray(w2, jnp.bfloat16), jnp.asarray(b2, jnp.float32))


@jax.jit
def sim_distil_forward(x1, x2, w1, b1, w2, b2):
    """Pallas forward of SimDistilModel (model=1, merge=False, 'ip' similarity).

    Args:
      x1, x2: [B, 768] float32 activations.
      w1, w2: [768, D] projection weights (nn.Linear weight, pre-transposed to
              [in, out]); pass bf16 (from prepare_params) for the fast path.
      b1, b2: [1, D] float32 biases.
    Returns:
      (y1 [B, D] f32, y2 [B, D] f32, out [B] f32)
    """
    B, F = x1.shape
    D = w1.shape[1]

    # Fallback cast (trace-time no-op when weights already arrive in bf16).
    w1 = w1.astype(jnp.bfloat16)
    w2 = w2.astype(jnp.bfloat16)
    b1 = b1.astype(jnp.float32).reshape(1, D)
    b2 = b2.astype(jnp.float32).reshape(1, D)

    tm, tn = _select_tiles(B, F, D)
    B_pad = _round_up(B, tm)
    if B_pad != B:
        pad = ((0, B_pad - B), (0, 0))
        x1 = jnp.pad(x1, pad)
        x2 = jnp.pad(x2, pad)
    ni, nj = B_pad // tm, D // tn
    fuse_sim = (tn % 128 == 0)   # lane-dense fused similarity partial possible

    flops = 2 * 2 * B_pad * F * D + 4 * B_pad * D
    bytes_accessed = (2 * B_pad * F * 4          # x1, x2 (f32, streamed once)
                      + ni * 2 * F * D * 2       # w1, w2 (bf16, ceil(B/tm) passes when D tiled)
                      + 2 * D * 4                # b1, b2
                      + 2 * B_pad * D * 4        # y1, y2 writes (f32)
                      + B_pad * 128 * nj * 4)    # fused similarity partial

    out_specs = [
        pl.BlockSpec((tm, tn), lambda i, j: (i, j)),     # y1
        pl.BlockSpec((tm, tn), lambda i, j: (i, j)),     # y2
    ]
    out_shape = [
        jax.ShapeDtypeStruct((B_pad, D), jnp.float32),
        jax.ShapeDtypeStruct((B_pad, D), jnp.float32),
    ]
    if fuse_sim:
        out_specs.append(pl.BlockSpec((tm, 128), lambda i, j: (i, j)))
        out_shape.append(jax.ShapeDtypeStruct((B_pad, 128 * nj), jnp.float32))

    results = pl.pallas_call(
        _proj_kernel,
        grid=(ni, nj),
        in_specs=[
            pl.BlockSpec((tm, F), lambda i, j: (i, 0)),   # x1 batch tile (f32)
            pl.BlockSpec((tm, F), lambda i, j: (i, 0)),   # x2 batch tile (f32)
            # Weights/biases are indexed only by j: fully resident when D is
            # untiled (nj == 1); when D is tiled they are re-streamed
            # ceil(B/tm) times, which the large tm keeps to a few passes.
            pl.BlockSpec((F, tn), lambda i, j: (0, j)),   # w1 (bf16)
            pl.BlockSpec((1, tn), lambda i, j: (0, j)),   # b1
            pl.BlockSpec((F, tn), lambda i, j: (0, j)),   # w2 (bf16)
            pl.BlockSpec((1, tn), lambda i, j: (0, j)),   # b2
        ],
        out_specs=out_specs,
        out_shape=out_shape,
        compiler_params=pltpu.CompilerParams(
            dimension_semantics=("parallel", "parallel"),
            vmem_limit_bytes=_VMEM_LIMIT_BYTES,
        ),
        cost_estimate=pl.CostEstimate(
            flops=flops, transcendentals=0, bytes_accessed=bytes_accessed),
    )(x1, x2, w1, b1, w2, b2)

    if fuse_sim:
        y1, y2, sim_part = results
    else:
        y1, y2 = results
        sim_part = None

    if B_pad != B:
        y1, y2 = y1[:B], y2[:B]
        if sim_part is not None:
            sim_part = sim_part[:B]

    if fuse_sim:
        out = jnp.sum(sim_part, axis=1)          # tiny 128*nj-lane reduce
    else:
        # Fallback (D not a multiple of 128): reduce in the wrapper.
        out = jnp.sum(y1 * y2, axis=1)
    return y1, y2, out


def init_linear_params(key, in_features, out_features):
    """Deterministic PyTorch-style nn.Linear init: U(-1/sqrt(in), 1/sqrt(in))."""
    kw, kb = jax.random.split(key)
    bound = 1.0 / jnp.sqrt(jnp.float32(in_features))
    # weight stored as [in, out] (transposed relative to torch's [out, in])
    w = jax.random.uniform(kw, (in_features, out_features), jnp.float32, -bound, bound)
    b = jax.random.uniform(kb, (1, out_features), jnp.float32, -bound, bound)
    return w, b


if __name__ == "__main__":
    key = jax.random.PRNGKey(0)
    k_x1, k_x2, k_p1, k_p2 = jax.random.split(key, 4)

    B = 8          # batch
    F = 768        # input embedding size (fixed by the module)
    D = 128        # `dimension` argument of SimDistilModel

    x1 = jax.random.normal(k_x1, (B, F), jnp.float32)
    x2 = jax.random.normal(k_x2, (B, F), jnp.float32)

    # merge=False -> projection1 and projection2 have independent parameters
    w1_f32, b1_f32 = init_linear_params(k_p1, F, D)
    w2_f32, b2_f32 = init_linear_params(k_p2, F, D)

    # One-time bf16 conversion OUTSIDE jit: the hot path never re-casts weights.
    w1, b1, w2, b2 = prepare_params(w1_f32, b1_f32, w2_f32, b2_f32)

    y1, y2, out = sim_distil_forward(x1, x2, w1, b1, w2, b2)
    jax.block_until_ready((y1, y2, out))

    # Reference uses the same bf16-operand / f32-accumulate contract, so the
    # comparison is tight; full-f32 semantics differ only by bf16 rounding of
    # the operands (~1e-2 relative), the intended trade-off for MXU throughput.
    y1_ref = jnp.dot(x1.astype(jnp.bfloat16), w1_f32.astype(jnp.bfloat16),
                     preferred_element_type=jnp.float32) + b1_f32
    y2_ref = jnp.dot(x2.astype(jnp.bfloat16), w2_f32.astype(jnp.bfloat16),
                     preferred_element_type=jnp.float32) + b2_f32
    out_ref = jnp.sum(y1_ref * y2_ref, axis=1)

    assert y1.shape == (B, D) and y2.shape == (B, D) and out.shape == (B,)
    assert jnp.allclose(y1, y1_ref, atol=2e-3, rtol=2e-3), "y1 mismatch"
    assert jnp.allclose(y2, y2_ref, atol=2e-3, rtol=2e-3), "y2 mismatch"
    assert jnp.allclose(out, out_ref, atol=1e-2, rtol=1e-2), "out mismatch"

    print("KERNEL_OK")
</pallas_src>

<mosaic_0001>
module attributes {stable_mosaic.version = 11 : i64} {
  func.func @_proj_kernel(%arg0: i32, %arg1: i32, %arg2: memref<8x768xf32, #tpu.memory_space<vmem>>, %arg3: memref<8x768xf32, #tpu.memory_space<vmem>>, %arg4: memref<768x128xbf16, #tpu.memory_space<vmem>>, %arg5: memref<1x128xf32, #tpu.memory_space<vmem>>, %arg6: memref<768x128xbf16, #tpu.memory_space<vmem>>, %arg7: memref<1x128xf32, #tpu.memory_space<vmem>>, %arg8: memref<8x128xf32, #tpu.memory_space<vmem>>, %arg9: memref<8x128xf32, #tpu.memory_space<vmem>>, %arg10: memref<8x128xf32, #tpu.memory_space<vmem>>) attributes {dimension_semantics = [#tpu.dimension_semantics<parallel>, #tpu.dimension_semantics<parallel>], iteration_bounds = array<i64: 1, 1>, scalar_prefetch = 0 : i64, scratch_operands = 0 : i64, tpu.core_type = #tpu.core_type<tc>, window_params = [{transform_indices = @transform_0, window_bounds = array<i64: 8, 768>}, {transform_indices = @transform_1, window_bounds = array<i64: 8, 768>}, {transform_indices = @transform_2, window_bounds = array<i64: 768, 128>}, {transform_indices = @transform_3, window_bounds = array<i64: 1, 128>}, {transform_indices = @transform_4, window_bounds = array<i64: 768, 128>}, {transform_indices = @transform_5, window_bounds = array<i64: 1, 128>}, {transform_indices = @transform_6, window_bounds = array<i64: 8, 128>}, {transform_indices = @transform_7, window_bounds = array<i64: 8, 128>}, {transform_indices = @transform_8, window_bounds = array<i64: 8, 128>}]} {
    %c0 = arith.constant 0 : index
    %c0_0 = arith.constant 0 : index
    %0 = vector.load %arg2[%c0, %c0_0] : memref<8x768xf32, #tpu.memory_space<vmem>>, vector<8x768xf32>
    %1 = arith.truncf %0 : vector<8x768xf32> to vector<8x768xbf16>
    %c0_1 = arith.constant 0 : index
    %c0_2 = arith.constant 0 : index
    %2 = vector.load %arg3[%c0_1, %c0_2] : memref<8x768xf32, #tpu.memory_space<vmem>>, vector<8x768xf32>
    %3 = arith.truncf %2 : vector<8x768xf32> to vector<8x768xbf16>
    %c0_3 = arith.constant 0 : index
    %c0_4 = arith.constant 0 : index
    %4 = vector.load %arg4[%c0_3, %c0_4] : memref<768x128xbf16, #tpu.memory_space<vmem>>, vector<768x128xbf16>
    %cst = arith.constant dense<0.000000e+00> : vector<8x128xf32>
    %5 = tpu.matmul %1, %4, %cst {dimension_numbers = #tpu.dot_dimension_numbers<[1], [0], [0], [1], [0, 0, 1, 1], [], []>} : vector<8x768xbf16>, vector<768x128xbf16>, vector<8x128xf32> -> vector<8x128xf32>
    %c0_5 = arith.constant 0 : index
    %c0_6 = arith.constant 0 : index
    %6 = vector.load %arg5[%c0_5, %c0_6] : memref<1x128xf32, #tpu.memory_space<vmem>>, vector<1x128xf32>
    %7 = vector.broadcast %6 : vector<1x128xf32> to vector<8x128xf32>
    %8 = arith.addf %5, %7 : vector<8x128xf32>
    %c0_7 = arith.constant 0 : index
    %c0_8 = arith.constant 0 : index
    %9 = vector.load %arg6[%c0_7, %c0_8] : memref<768x128xbf16, #tpu.memory_space<vmem>>, vector<768x128xbf16>
    %cst_9 = arith.constant dense<0.000000e+00> : vector<8x128xf32>
    %10 = tpu.matmul %3, %9, %cst_9 {dimension_numbers = #tpu.dot_dimension_numbers<[1], [0], [0], [1], [0, 0, 1, 1], [], []>} : vector<8x768xbf16>, vector<768x128xbf16>, vector<8x128xf32> -> vector<8x128xf32>
    %c0_10 = arith.constant 0 : index
    %c0_11 = arith.constant 0 : index
    %11 = vector.load %arg7[%c0_10, %c0_11] : memref<1x128xf32, #tpu.memory_space<vmem>>, vector<1x128xf32>
    %12 = vector.broadcast %11 : vector<1x128xf32> to vector<8x128xf32>
    %13 = arith.addf %10, %12 : vector<8x128xf32>
    %c0_12 = arith.constant 0 : index
    %c0_13 = arith.constant 0 : index
    %14 = vector.load %arg8[%c0_12, %c0_13] : memref<8x128xf32, #tpu.memory_space<vmem>>, vector<8x128xf32>
    tpu.vector_store %arg8[%c0_12, %c0_13], %8 {strides = array<i32>} : memref<8x128xf32, #tpu.memory_space<vmem>>, vector<8x128xf32>,
    %c0_14 = arith.constant 0 : index
    %c0_15 = arith.constant 0 : index
    %15 = vector.load %arg9[%c0_14, %c0_15] : memref<8x128xf32, #tpu.memory_space<vmem>>, vector<8x128xf32>
    tpu.vector_store %arg9[%c0_14, %c0_15], %13 {strides = array<i32>} : memref<8x128xf32, #tpu.memory_space<vmem>>, vector<8x128xf32>,
    %16 = arith.mulf %8, %13 : vector<8x128xf32>
    %c0_16 = arith.constant 0 : index
    %c0_17 = arith.constant 0 : index
    %17 = vector.load %arg10[%c0_16, %c0_17] : memref<8x128xf32, #tpu.memory_space<vmem>>, vector<8x128xf32>
    tpu.vector_store %arg10[%c0_16, %c0_17], %16 {strides = array<i32>} : memref<8x128xf32, #tpu.memory_space<vmem>>, vector<8x128xf32>,
    return
  }
  func.func @transform_0(%arg0: i32, %arg1: i32) -> (i32, i32) {
    %c0_i32 = arith.constant 0 : i32
    %c0_i32_0 = arith.constant 0 : i32
    return %arg0, %c0_i32 : i32, i32
  }
  func.func @transform_1(%arg0: i32, %arg1: i32) -> (i32, i32) {
    %c0_i32 = arith.constant 0 : i32
    %c0_i32_0 = arith.constant 0 : i32
    return %arg0, %c0_i32 : i32, i32
  }
  func.func @transform_2(%arg0: i32, %arg1: i32) -> (i32, i32) {
    %c0_i32 = arith.constant 0 : i32
    %c0_i32_0 = arith.constant 0 : i32
    return %c0_i32, %arg1 : i32, i32
  }
  func.func @transform_3(%arg0: i32, %arg1: i32) -> (i32, i32) {
    %c0_i32 = arith.constant 0 : i32
    %c0_i32_0 = arith.constant 0 : i32
    return %c0_i32, %arg1 : i32, i32
  }
  func.func @transform_4(%arg0: i32, %arg1: i32) -> (i32, i32) {
    %c0_i32 = arith.constant 0 : i32
    %c0_i32_0 = arith.constant 0 : i32
    return %c0_i32, %arg1 : i32, i32
  }
  func.func @transform_5(%arg0: i32, %arg1: i32) -> (i32, i32) {
    %c0_i32 = arith.constant 0 : i32
    %c0_i32_0 = arith.constant 0 : i32
    return %c0_i32, %arg1 : i32, i32
  }
  func.func @transform_6(%arg0: i32, %arg1: i32) -> (i32, i32) {
    %c0_i32 = arith.constant 0 : i32
    return %arg0, %arg1 : i32, i32
  }
  func.func @transform_7(%arg0: i32, %arg1: i32) -> (i32, i32) {
    %c0_i32 = arith.constant 0 : i32
    return %arg0, %arg1 : i32, i32
  }
  func.func @transform_8(%arg0: i32, %arg1: i32) -> (i32, i32) {
    %c0_i32 = arith.constant 0 : i32
    return %arg0, %arg1 : i32, i32
  }
}

</mosaic_0001>

<bundles_post_ra>
// kernel: sim_distil_forward.1
= control target key start
LH: loop header
LB: loop body
LE: loop exit
PB: predicated region body
PF: predicated region fallthrough
CT: control target
= control target key end

     0   :  { %14 = vsyncpa [#allocation3], 0  ;;  %s1775_s0 = inlined_call_operand.hbm [shape: f32[8,768], index: 0, kind: input, shape index: {}]   ;;  %s1776_s1 = inlined_call_operand.hbm [shape: f32[8,768], index: 1, kind: input, shape index: {}]   ;;  %s1777_s2 = inlined_call_operand.hbm [shape: bf16[768,128], index: 2, kind: input, shape index: {}]   ;;  %s1778_s3 = inlined_call_operand.vmem [shape: f32[1,128], index: 3, kind: input, shape index: {}]   ;;  %s1779_s4 = inlined_call_operand.hbm [shape: bf16[768,128], index: 4, kind: input, shape index: {}]   ;;  %s1780_s5 = inlined_call_operand.vmem [shape: f32[1,128], index: 5, kind: input, shape index: {}]   ;;  %s1781_s6 = inlined_call_operand.hbm [shape: f32[8,128], index: 6, kind: output, shape index: {0}]   ;;  %s1782_s7 = inlined_call_operand.hbm [shape: f32[8,128], index: 7, kind: output, shape index: {1}]   ;;  %s1783_s8 = inlined_call_operand.vmem [shape: f32[8,128], index: 8, kind: output, shape index: {2}]  }
   0x1   :  { %15 = vsyncpa [#allocation6], 0 }
   0x2   :  { %16 = vsyncpa [#allocation9], 0 }
   0x3   :  { %17 = vsyncpa [#allocation4], 0 }
   0x4   :  { %18 = vsyncpa [#allocation12], 0  ;;  %s1641_s27 = smov [#allocation5]   ;;  %s1642_s29 = smov [#allocation2]  }
   0x5   :  { %s35_s28 = sshll.u32 %s1641_s27, 4  ;;  %s25_s30 = sshll.u32 %s1642_s29, 4  ;;  %s36_s28 = int_to_ptr.vmem [resolvable:$true] %s35_s28  ;;  %s26_s30 = int_to_ptr.vmem [resolvable:$true] %s25_s30 }
   0x6   :  { %s1499_s11 = scalar_lea.hbm %s1776_s1, 768 }
   0x7   :  { %p1500_p0 = scmp.ne.s32.totalorder %s1776_s1, %s1499_s11  ;;  %p1503_p1 = scmp.lt.u32.totalorder %s1499_s11, %s1776_s1 }
   0x9   :  { %p1505_p2 = pnand %p1503_p1, %p1500_p0 }
   0xb   :  { %1508 = shalt.err (!%p1505_p2)
}
   0xc   :  { %s1509_s16 = scalar_lea.vmem %s36_s28, 768  ;;  %p1514_p4 = scmp.lt.s32.totalorder %s36_s28, %s36_s28 }
   0xd   :  { %p1510_p3 = scmp.ne.s32.totalorder %s36_s28, %s1509_s16  ;;  %p1515_p5 = scmp.lt.s32.totalorder %s1509_s16, %s1509_s16 }
   0xf   :  { %p1516_p6 = por %p1515_p5, %p1514_p4 }
  0x11   :  { %p1517_p7 = pnand %p1516_p6, %p1510_p3 }
  0x13   :  { %1520 = shalt.err (!%p1517_p7)
}
  0x14   :  { %38 = dma.hbm_to_vmem [thread:$0]  %s1776_s1, 768, %s36_s28, [#allocation6]  }
  0x15   :  { %s1521_s21 = scalar_lea.hbm %s1775_s0, 768 }
  0x16   :  { %p1522_p8 = scmp.ne.s32.totalorder %s1775_s0, %s1521_s21  ;;  %p1525_p9 = scmp.lt.u32.totalorder %s1521_s21, %s1775_s0 }
  0x18   :  { %p1527_p10 = pnand %p1525_p9, %p1522_p8 }
  0x1a   :  { %1530 = shalt.err (!%p1527_p10)
}
  0x1b   :  { %s1531_s26 = scalar_lea.vmem %s26_s30, 768  ;;  %p1536_p12 = scmp.lt.s32.totalorder %s26_s30, %s26_s30 }
  0x1c   :  { %p1532_p11 = scmp.ne.s32.totalorder %s26_s30, %s1531_s26  ;;  %p1537_p13 = scmp.lt.s32.totalorder %s1531_s26, %s1531_s26 }
  0x1e   :  { %p1538_p0 = por %p1537_p13, %p1536_p12 }
  0x20   :  { %p1539_p1 = pnand %p1538_p0, %p1532_p11 }
  0x22   :  { %1542 = shalt.err (!%p1539_p1)
}
  0x23   :  { %28 = dma.hbm_to_vmem [thread:$0]  %s1775_s0, 768, %s26_s30, [#allocation3]  }
  0x24   :  { %s1643_s28 = smov [#allocation7]   ;;  %s1543_s11 = scalar_lea.hbm %s1777_s2, 6144 }
  0x25   :  { %s44_s29 = sshll.u32 %s1643_s28, 4  ;;  %p1544_p2 = scmp.ne.s32.totalorder %s1777_s2, %s1543_s11  ;;  %s45_s29 = int_to_ptr.vmem [resolvable:$true] %s44_s29 }
  0x26   :  { %p1547_p3 = scmp.lt.u32.totalorder %s1543_s11, %s1777_s2 }
  0x28   :  { %p1549_p4 = pnand %p1547_p3, %p1544_p2 }
  0x2a   :  { %1552 = shalt.err (!%p1549_p4)
}
  0x2b   :  { %s1553_s16 = scalar_lea.vmem %s45_s29, 6144  ;;  %p1558_p6 = scmp.lt.s32.totalorder %s45_s29, %s45_s29 }
  0x2c   :  { %p1554_p5 = scmp.ne.s32.totalorder %s45_s29, %s1553_s16  ;;  %p1559_p7 = scmp.lt.s32.totalorder %s1553_s16, %s1553_s16 }
  0x2e   :  { %p1560_p8 = por %p1559_p7, %p1558_p6 }
  0x30   :  { %p1561_p9 = pnand %p1560_p8, %p1554_p5 }
  0x32   :  { %1564 = shalt.err (!%p1561_p9)
}
  0x33   :  { %s1644_s0 = smov 64   ;;  %s1645_s30 = smov 4  }
  0x34   :  { %50 = dma.hbm_to_vmem [thread:$0]  %s1777_s2, 6144, %s45_s29, [#allocation6], %s1644_s0, %s1644_s0, %s1645_s30  }
  0x35   :  { %s1646_s19 = smov [#allocation8]   ;;  %s1565_s23 = scalar_lea.hbm %s1779_s4, 6144 }
  0x36   :  { %s58_s20 = sshll.u32 %s1646_s19, 4  ;;  %p1566_p10 = scmp.ne.s32.totalorder %s1779_s4, %s1565_s23  ;;  %s59_s20 = int_to_ptr.vmem [resolvable:$true] %s58_s20 }
  0x37   :  { %p1569_p11 = scmp.lt.u32.totalorder %s1565_s23, %s1779_s4 }
  0x39   :  { %p1571_p12 = pnand %p1569_p11, %p1566_p10 }
  0x3b   :  { %1574 = shalt.err (!%p1571_p12)
}
  0x3c   :  { %s1575_s27 = scalar_lea.vmem %s59_s20, 6144  ;;  %p1580_p0 = scmp.lt.s32.totalorder %s59_s20, %s59_s20 }
  0x3d   :  { %p1576_p13 = scmp.ne.s32.totalorder %s59_s20, %s1575_s27  ;;  %p1581_p1 = scmp.lt.s32.totalorder %s1575_s27, %s1575_s27 }
  0x3f   :  { %p1582_p2 = por %p1581_p1, %p1580_p0 }
  0x41   :  { %p1583_p3 = pnand %p1582_p2, %p1576_p13 }
  0x43   :  { %1586 = shalt.err (!%p1583_p3)
}
  0x44   :  { %64 = dma.hbm_to_vmem [thread:$0]  %s1779_s4, 6144, %s59_s20, [#allocation9], %s1644_s0, %s1644_s0, %s1645_s30  }
  0x45   :  { %1631 = dma.done.wait [#allocation3], 768  }
  0x46   :  { %1632 = vsyncadd [#allocation3], 4294966528 }
  0x47   :  { %1633 = dma.done.wait [#allocation6], 6912  }
  0x48   :  { %1634 = vsyncadd [#allocation6], 4294960384 }
  0x49   :  { %1635 = dma.done.wait [#allocation9], 6144  }
  0x4a   :  { %1636 = vsyncadd [#allocation9], 4294961152  ;;  %v1403_v0 = vld [vmem:[#allocation7 + $0x40] sm:$0xff]   ;;  %v1407_v4 = vld [vmem:[#allocation7 + $0x48] sm:$0xff]   ;;  %s1647_s9 = smov [#allocation10]  }
  0x4b   :  { %v1404_v1 = vld [vmem:[#allocation7 + $0xc0] sm:$0xff]   ;;  %1263 = vmatprep.subr.bf16.mxu0 %v1403_v0  ;;  %v1408_v5 = vld [vmem:[#allocation7 + $0xc8] sm:$0xff]   ;;  %v1411_v8 = vld [vmem:[#allocation7 + $0x50] sm:$0xff]   ;;  %s1136_s10 = sshll.u32 %s1647_s9, 4  ;;  %s1137_s10 = int_to_ptr.vmem [resolvable:$true] %s1136_s10 }
  0x4c   :  { %v1405_v2 = vld [vmem:[#allocation7] sm:$0xff]   ;;  %1285 = vmatprep.subr.bf16.mxu1 %v1404_v1  ;;  %v1409_v6 = vld [vmem:[#allocation7 + $0x8] sm:$0xff]   ;;  %v1412_v9 = vld [vmem:[#allocation7 + $0xd0] sm:$0xff]   ;;  %p1592_p5 = scmp.lt.s32.totalorder %s1137_s10, %s1137_s10 }
  0x4d   :  { %v1406_v3 = vld [vmem:[#allocation7 + $0x80] sm:$0xff]   ;;  %1264 = vmatpush3.bf16.msra.mxu0 %v1405_v2  ;;  %v1410_v7 = vld [vmem:[#allocation7 + $0x88] sm:$0xff]   ;;  %v1413_v10 = vld [vmem:[#allocation7 + $0x10] sm:$0xff]  }
  0x4e   :  { %1286 = vmatpush3.bf16.msra.mxu1 %v1406_v3  ;;  %1265 = vmatprep.subr.bf16.mxu0 %v1407_v4  ;;  %v1414_v11 = vld [vmem:[#allocation7 + $0x90] sm:$0xff]   ;;  %v1415_v12 = vld [vmem:[#allocation7 + $0x58] sm:$0xff]   ;;  %v1419_v16 = vld [vmem:[#allocation7 + $0x60] sm:$0xff]  }
  0x4f   :  { %1287 = vmatprep.subr.bf16.mxu1 %v1408_v5  ;;  %v1416_v13 = vld [vmem:[#allocation7 + $0xd8] sm:$0xff]   ;;  %v1420_v17 = vld [vmem:[#allocation7 + $0xe0] sm:$0xff]   ;;  %v1423_v20 = vld [vmem:[#allocation7 + $0x68] sm:$0xff]  }
  0x50   :  { %v1417_v14 = vld [vmem:[#allocation7 + $0x18] sm:$0xff]   ;;  %v1421_v18 = vld [vmem:[#allocation7 + $0x20] sm:$0xff]   ;;  %v1424_v21 = vld [vmem:[#allocation7 + $0xe8] sm:$0xff]  }
  0x51   :  { %1266 = vmatpush3.bf16.msra.mxu0 %v1409_v6  ;;  %v1418_v15 = vld [vmem:[#allocation7 + $0x98] sm:$0xff]   ;;  %v1422_v19 = vld [vmem:[#allocation7 + $0xa0] sm:$0xff]   ;;  %v1425_v22 = vld [vmem:[#allocation7 + $0x28] sm:$0xff]  }
  0x52   :  { %1288 = vmatpush3.bf16.msra.mxu1 %v1410_v7  ;;  %1267 = vmatprep.subr.bf16.mxu0 %v1411_v8  ;;  %v1426_v23 = vld [vmem:[#allocation7 + $0xa8] sm:$0xff]   ;;  %v1427_v24 = vld [vmem:[#allocation7 + $0x70] sm:$0xff]   ;;  %v1431_v28 = vld [vmem:[#allocation7 + $0x78] sm:$0xff]  }
  0x53   :  { %1289 = vmatprep.subr.bf16.mxu1 %v1412_v9  ;;  %v1428_v25 = vld [vmem:[#allocation7 + $0xf0] sm:$0xff]   ;;  %v1432_v29 = vld [vmem:[#allocation7 + $0xf8] sm:$0xff]   ;;  %v81_v32 = vld [vmem:[#allocation2 + $0x8] sm:$0xff] }
  0x54   :  { %v1429_v26 = vld [vmem:[#allocation7 + $0x30] sm:$0xff]   ;;  %v1433_v30 = vld [vmem:[#allocation7 + $0x38] sm:$0xff]   ;;  %v80_v34 = vld [vmem:[#allocation2] sm:$0xff]  ;;  %v87_v35 = vpack.c.bf16 %v81_v32, %v81_v32 }
  0x55   :  { %1268 = vmatpush3.bf16.msra.mxu0 %v1413_v10  ;;  %v1430_v27 = vld [vmem:[#allocation7 + $0xb0] sm:$0xff]   ;;  %v1434_v31 = vld [vmem:[#allocation7 + $0xb8] sm:$0xff]   ;;  %v86_v37 = vpack.c.bf16 %v80_v34, %v80_v34  ;;  %v1435_v40 = vld [vmem:[#allocation7 + $0x140] sm:$0xff]  }
  0x56   :  { %1290 = vmatpush3.bf16.msra.mxu1 %v1414_v11  ;;  %1269 = vmatprep.subr.bf16.mxu0 %v1415_v12  ;;  %v83_v33 = vld [vmem:[#allocation2 + $0x18] sm:$0xff]  ;;  %v82_v38 = vld [vmem:[#allocation2 + $0x10] sm:$0xff]  ;;  %v1436_v41 = vld [vmem:[#allocation8 + $0x40] sm:$0xff]  }
  0x57   :  { %1291 = vmatprep.subr.bf16.mxu1 %v1416_v13  ;;  %v89_v36 = vpack.c.bf16 %v83_v33, %v83_v33  ;;  %v88_v39 = vpack.c.bf16 %v82_v38, %v82_v38  ;;  %527 = vmatprep.mubr.bf16.mxu0 %v87_v35  ;;  %v1437_v42 = vld [vmem:[#allocation7 + $0x100] sm:$0xff]   ;;  %v1439_v44 = vld [vmem:[#allocation7 + $0x148] sm:$0xff]   ;;  %v1443_v48 = vld [vmem:[#allocation7 + $0x150] sm:$0xff]  }
  0x58   :  { %v1438_v43 = vld [vmem:[#allocation8] sm:$0xff]   ;;  %v1440_v45 = vld [vmem:[#allocation8 + $0x48] sm:$0xff]   ;;  %v1444_v49 = vld [vmem:[#allocation8 + $0x50] sm:$0xff]  }
  0x59   :  { %1270 = vmatpush3.bf16.msra.mxu0 %v1417_v14  ;;  %567 = vmatprep.mubr.bf16.mxu1 %v89_v36  ;;  %v1441_v46 = vld [vmem:[#allocation7 + $0x108] sm:$0xff]   ;;  %v1445_v50 = vld [vmem:[#allocation7 + $0x110] sm:$0xff]   ;;  %v1447_v52 = vld [vmem:[#allocation7 + $0x158] sm:$0xff]  }
  0x5a   :  { %1292 = vmatpush3.bf16.msra.mxu1 %v1418_v15  ;;  %1271 = vmatprep.subr.bf16.mxu0 %v1419_v16  ;;  %v1442_v47 = vld [vmem:[#allocation8 + $0x8] sm:$0xff]   ;;  %v1446_v51 = vld [vmem:[#allocation8 + $0x10] sm:$0xff]   ;;  %v1448_v53 = vld [vmem:[#allocation8 + $0x58] sm:$0xff]  }
  0x5b   :  { %1293 = vmatprep.subr.bf16.mxu1 %v1420_v17  ;;  %v1449_v54 = vld [vmem:[#allocation7 + $0x118] sm:$0xff]   ;;  %v1451_v56 = vld [vmem:[#allocation7 + $0x160] sm:$0xff]   ;;  %v1455_v60 = vld [vmem:[#allocation7 + $0x168] sm:$0xff]  }
  0x5c   :  { %v1450_v55 = vld [vmem:[#allocation8 + $0x18] sm:$0xff]   ;;  %v1452_v57 = vld [vmem:[#allocation8 + $0x60] sm:$0xff]   ;;  %v1456_v61 = vld [vmem:[#allocation8 + $0x68] sm:$0xff]  }
  0x5d   :  { %1272 = vmatpush3.bf16.msra.mxu0 %v1421_v18  ;;  %v1453_v58 = vld [vmem:[#allocation7 + $0x120] sm:$0xff]   ;;  %v1457_v62 = vld [vmem:[#allocation7 + $0x128] sm:$0xff]   ;;  %v1459_v0 = vld [vmem:[#allocation7 + $0x170] sm:$0xff]  }
  0x5e   :  { %1294 = vmatpush3.bf16.msra.mxu1 %v1422_v19  ;;  %1273 = vmatprep.subr.bf16.mxu0 %v1423_v20  ;;  %v1454_v59 = vld [vmem:[#allocation8 + $0x20] sm:$0xff]   ;;  %v1458_v63 = vld [vmem:[#allocation8 + $0x28] sm:$0xff]   ;;  %v1460_v1 = vld [vmem:[#allocation8 + $0x70] sm:$0xff]  }
  0x5f   :  { %1295 = vmatprep.subr.bf16.mxu1 %v1424_v21  ;;  %v1461_v2 = vld [vmem:[#allocation7 + $0x130] sm:$0xff]   ;;  %v1463_v4 = vld [vmem:[#allocation7 + $0x178] sm:$0xff]   ;;  %v85_v8 = vld [vmem:[#allocation2 + $0x28] sm:$0xff] }
  0x60   :  { %v1462_v3 = vld [vmem:[#allocation8 + $0x30] sm:$0xff]   ;;  %v1464_v5 = vld [vmem:[#allocation8 + $0x78] sm:$0xff]   ;;  %v91_v10 = vpack.c.bf16 %v85_v8, %v85_v8  ;;  %v84_v12 = vld [vmem:[#allocation2 + $0x20] sm:$0xff] }
  0x61   :  { %1274 = vmatpush3.bf16.msra.mxu0 %v1425_v22  ;;  %v1465_v6 = vld [vmem:[#allocation7 + $0x138] sm:$0xff]   ;;  %v92_v13 = vld [vmem:[#allocation5] sm:$0xff]  ;;  %v90_v14 = vpack.c.bf16 %v84_v12, %v84_v12  ;;  %v1467_v16 = vld [vmem:[#allocation8 + $0xc0] sm:$0xff]  }
  0x62   :  { %1296 = vmatpush3.bf16.msra.mxu1 %v1426_v23  ;;  %1275 = vmatprep.subr.bf16.mxu0 %v1427_v24  ;;  %v1466_v7 = vld [vmem:[#allocation8 + $0x38] sm:$0xff]   ;;  %v98_v15 = vpack.c.bf16 %v92_v13, %v92_v13  ;;  %v1468_v17 = vld [vmem:[#allocation8 + $0x140] sm:$0xff]   ;;  %v1471_v20 = vld [vmem:[#allocation8 + $0xc8] sm:$0xff]  }
  0x63   :  { %1297 = vmatprep.subr.bf16.mxu1 %v1428_v25  ;;  %v93_v9 = vld [vmem:[#allocation5 + $0x8] sm:$0xff]  ;;  %v1469_v18 = vld [vmem:[#allocation8 + $0x80] sm:$0xff]   ;;  %v1472_v21 = vld [vmem:[#allocation8 + $0x148] sm:$0xff]  }
  0x64   :  { %v99_v11 = vpack.c.bf16 %v93_v9, %v93_v9  ;;  %v1470_v19 = vld [vmem:[#allocation8 + $0x100] sm:$0xff]   ;;  %v1473_v22 = vld [vmem:[#allocation8 + $0x88] sm:$0xff]   ;;  %v1475_v24 = vld [vmem:[#allocation8 + $0xd0] sm:$0xff]  }
  0x65   :  { %1276 = vmatpush3.bf16.msra.mxu0 %v1429_v26  ;;  %v1474_v23 = vld [vmem:[#allocation8 + $0x108] sm:$0xff]   ;;  %v1476_v25 = vld [vmem:[#allocation8 + $0x150] sm:$0xff]   ;;  %v1483_v32 = vld [vmem:[#allocation8 + $0xe0] sm:$0xff]  }
  0x66   :  { %1298 = vmatpush3.bf16.msra.mxu1 %v1430_v27  ;;  %1277 = vmatprep.subr.bf16.mxu0 %v1431_v28  ;;  %v1477_v26 = vld [vmem:[#allocation8 + $0x90] sm:$0xff]   ;;  %v1479_v28 = vld [vmem:[#allocation8 + $0xd8] sm:$0xff]   ;;  %v1484_v33 = vld [vmem:[#allocation8 + $0x160] sm:$0xff]  }
  0x67   :  { %1299 = vmatprep.subr.bf16.mxu1 %v1432_v29  ;;  %v1478_v27 = vld [vmem:[#allocation8 + $0x110] sm:$0xff]   ;;  %v1480_v29 = vld [vmem:[#allocation8 + $0x158] sm:$0xff]   ;;  %v1485_v34 = vld [vmem:[#allocation8 + $0xa0] sm:$0xff]  }
  0x68   :  { %v1486_v35 = vld [vmem:[#allocation8 + $0x120] sm:$0xff]   ;;  %v1487_v36 = vld [vmem:[#allocation8 + $0xe8] sm:$0xff]  }
  0x69   :  { %1278 = vmatpush3.bf16.msra.mxu0 %v1433_v30  ;;  %v1481_v30 = vld [vmem:[#allocation8 + $0x98] sm:$0xff]   ;;  %v1489_v38 = vld [vmem:[#allocation8 + $0xa8] sm:$0xff]  }
  0x6a   :  { %1300 = vmatpush3.bf16.msra.mxu1 %v1434_v31  ;;  %1307 = vmatprep.subr.bf16.mxu0 %v1435_v40  ;;  %v1482_v31 = vld [vmem:[#allocation8 + $0x118] sm:$0xff]   ;;  %v1491_v40 = vld [vmem:[#allocation8 + $0xf0] sm:$0xff]  }
  0x6b   :  { %1329 = vmatprep.subr.bf16.mxu1 %v1436_v41  ;;  %v1492_v41 = vld [vmem:[#allocation8 + $0x170] sm:$0xff]  }
  0x6c   :  { %528 = vmatmul.mubr.bf16.vlgmr.msra.gmra.mrb[0].mxu0 %v86_v37  ;;  %v1488_v37 = vld [vmem:[#allocation8 + $0x168] sm:$0xff]  }
  0x6d   :  { %568 = vmatmul.mubr.bf16.vlgmr.msra.gmra.mrb[0].mxu1 %v88_v39  ;;  %1308 = vmatpush3.bf16.msra.mxu0 %v1437_v42  ;;  %v1490_v39 = vld [vmem:[#allocation8 + $0x128] sm:$0xff]   ;;  %v1493_v42 = vld [vmem:[#allocation8 + $0xb0] sm:$0xff]  }
  0x6e   :  { %1330 = vmatpush3.bf16.msra.mxu1 %v1438_v43  ;;  %1309 = vmatprep.subr.bf16.mxu0 %v1439_v44  ;;  %v1494_v43 = vld [vmem:[#allocation8 + $0x130] sm:$0xff]   ;;  %v1495_v44 = vld [vmem:[#allocation8 + $0xf8] sm:$0xff]  }
  0x6f   :  { %1331 = vmatprep.subr.bf16.mxu1 %v1440_v45  ;;  %607 = vmatprep.mubr.bf16.mxu0 %v91_v10  ;;  %v1496_v45 = vld [vmem:[#allocation8 + $0x178] sm:$0xff]  }
  0x70   :  { %1038 = vmatprep.mubr.bf16.mxu1 %v99_v11 }
  0x71   :  { %1310 = vmatpush3.bf16.msra.mxu0 %v1441_v46  ;;  %v1497_v46 = vld [vmem:[#allocation8 + $0xb8] sm:$0xff]  }
  0x72   :  { %1332 = vmatpush3.bf16.msra.mxu1 %v1442_v47  ;;  %1311 = vmatprep.subr.bf16.mxu0 %v1443_v48  ;;  %v1498_v47 = vld [vmem:[#allocation8 + $0x138] sm:$0xff]   ;;  %v95_v48 = vld [vmem:[#allocation5 + $0x18] sm:$0xff] }
  0x73   :  { %1333 = vmatprep.subr.bf16.mxu1 %v1444_v49  ;;  %v101_v49 = vpack.c.bf16 %v95_v48, %v95_v48 }
  0x75   :  { %1312 = vmatpush3.bf16.msra.mxu0 %v1445_v50  ;;  %v97_v50 = vld [vmem:[#allocation5 + $0x28] sm:$0xff] }
  0x76   :  { %1334 = vmatpush3.bf16.msra.mxu1 %v1446_v51  ;;  %1313 = vmatprep.subr.bf16.mxu0 %v1447_v52  ;;  %v94_v51 = vld [vmem:[#allocation5 + $0x10] sm:$0xff]  ;;  %v96_v52 = vld [vmem:[#allocation5 + $0x20] sm:$0xff] }
  0x77   :  { %1335 = vmatprep.subr.bf16.mxu1 %v1448_v53  ;;  %v103_v53 = vpack.c.bf16 %v97_v50, %v97_v50 }
  0x79   :  { %1314 = vmatpush3.bf16.msra.mxu0 %v1449_v54  ;;  %v100_v54 = vpack.c.bf16 %v94_v51, %v94_v51 }
  0x7a   :  { %1336 = vmatpush3.bf16.msra.mxu1 %v1450_v55  ;;  %1315 = vmatprep.subr.bf16.mxu0 %v1451_v56  ;;  %v102_v55 = vpack.c.bf16 %v96_v52, %v96_v52 }
  0x7b   :  { %1337 = vmatprep.subr.bf16.mxu1 %v1452_v57 }
  0x7d   :  { %1316 = vmatpush3.bf16.msra.mxu0 %v1453_v58  ;;  %v1165_v58 = vld [vmem:[%s1778_s3] ss:$0 sm:$0xff]  ;;  %s1587_s3 = scalar_lea.vmem %s1137_s10, 128 }
  0x7e   :  { %1338 = vmatpush3.bf16.msra.mxu1 %v1454_v59  ;;  %1317 = vmatprep.subr.bf16.mxu0 %v1455_v60  ;;  %p1588_p4 = scmp.ne.s32.totalorder %s1137_s10, %s1587_s3  ;;  %p1593_p6 = scmp.lt.s32.totalorder %s1587_s3, %s1587_s3 }
  0x7f   :  { %1339 = vmatprep.subr.bf16.mxu1 %v1456_v61 }
  0x80   :  { %p1594_p7 = por %p1593_p6, %p1592_p5 }
  0x81   :  { %1318 = vmatpush3.bf16.msra.mxu0 %v1457_v62 }
  0x82   :  { %1340 = vmatpush3.bf16.msra.mxu1 %v1458_v63  ;;  %1319 = vmatprep.subr.bf16.mxu0 %v1459_v0  ;;  %p1595_p8 = pnand %p1594_p7, %p1588_p4 }
  0x83   :  { %1341 = vmatprep.subr.bf16.mxu1 %v1460_v1 }
  0x85   :  { %1320 = vmatpush3.bf16.msra.mxu0 %v1461_v2 }
  0x86   :  { %1342 = vmatpush3.bf16.msra.mxu1 %v1462_v3  ;;  %1321 = vmatprep.subr.bf16.mxu0 %v1463_v4 }
  0x87   :  { %1343 = vmatprep.subr.bf16.mxu1 %v1464_v5 }
  0x89   :  { %1322 = vmatpush3.bf16.msra.mxu0 %v1465_v6 }
  0x8a   :  { %1344 = vmatpush3.bf16.msra.mxu1 %v1466_v7  ;;  %1351 = vmatprep.subr.bf16.mxu0 %v1467_v16 }
  0x8b   :  { %1373 = vmatprep.subr.bf16.mxu1 %v1468_v17 }
  0x8c   :  { %608 = vmatmul.mubr.bf16.vlgmr.msra.gmra.mrb[4].mxu0 %v90_v14 }
  0x8d   :  { %1039 = vmatmul.mubr.bf16.vlgmr.msra.gmra.mrb[4].mxu1 %v98_v15  ;;  %1352 = vmatpush3.bf16.msra.mxu0 %v1469_v18 }
  0x8e   :  { %1374 = vmatpush3.bf16.msra.mxu1 %v1470_v19  ;;  %1353 = vmatprep.subr.bf16.mxu0 %v1471_v20 }
  0x8f   :  { %1375 = vmatprep.subr.bf16.mxu1 %v1472_v21  ;;  %1078 = vmatprep.mubr.bf16.mxu0 %v101_v49 }
  0x90   :  { %1118 = vmatprep.mubr.bf16.mxu1 %v103_v53 }
  0x91   :  { %1354 = vmatpush3.bf16.msra.mxu0 %v1473_v22 }
  0x92   :  { %1376 = vmatpush3.bf16.msra.mxu1 %v1474_v23  ;;  %1355 = vmatprep.subr.bf16.mxu0 %v1475_v24 }
  0x93   :  { %1377 = vmatprep.subr.bf16.mxu1 %v1476_v25 }
  0x95   :  { %1356 = vmatpush3.bf16.msra.mxu0 %v1477_v26 }
  0x96   :  { %1378 = vmatpush3.bf16.msra.mxu1 %v1478_v27  ;;  %1357 = vmatprep.subr.bf16.mxu0 %v1479_v28 }
  0x97   :  { %1379 = vmatprep.subr.bf16.mxu1 %v1480_v29 }
  0x99   :  { %1358 = vmatpush3.bf16.msra.mxu0 %v1481_v30 }
  0x9a   :  { %1380 = vmatpush3.bf16.msra.mxu1 %v1482_v31  ;;  %1359 = vmatprep.subr.bf16.mxu0 %v1483_v32 }
  0x9b   :  { %1381 = vmatprep.subr.bf16.mxu1 %v1484_v33 }
  0x9d   :  { %1360 = vmatpush3.bf16.msra.mxu0 %v1485_v34 }
  0x9e   :  { %1382 = vmatpush3.bf16.msra.mxu1 %v1486_v35  ;;  %1361 = vmatprep.subr.bf16.mxu0 %v1487_v36 }
  0x9f   :  { %1383 = vmatprep.subr.bf16.mxu1 %v1488_v37 }
  0xa1   :  { %1362 = vmatpush3.bf16.msra.mxu0 %v1489_v38 }
  0xa2   :  { %1384 = vmatpush3.bf16.msra.mxu1 %v1490_v39  ;;  %1363 = vmatprep.subr.bf16.mxu0 %v1491_v40 }
  0xa3   :  { %1385 = vmatprep.subr.bf16.mxu1 %v1492_v41 }
  0xa5   :  { %1364 = vmatpush3.bf16.msra.mxu0 %v1493_v42 }
  0xa6   :  { %1386 = vmatpush3.bf16.msra.mxu1 %v1494_v43  ;;  %1365 = vmatprep.subr.bf16.mxu0 %v1495_v44 }
  0xa7   :  { %1387 = vmatprep.subr.bf16.mxu1 %v1496_v45 }
  0xa9   :  { %1366 = vmatpush3.bf16.msra.mxu0 %v1497_v46 }
  0xaa   :  { %1388 = vmatpush3.bf16.msra.mxu1 %v1498_v47 }
  0xac   :  { %1079 = vmatmul.mubr.bf16.vlgmr.msra.gmra.mrb[8].mxu0 %v100_v54 }
  0xad   :  { %1119 = vmatmul.mubr.bf16.vlgmr.msra.gmra.mrb[8].mxu1 %v102_v55 }
 0x13f   :  { %v1279_v56 = vpop.f32.mrb[0].mxu0 }
 0x140   :  { %v1301_v57 = vpop.f32.mrb[0].mxu1  ;;  %v1280_v59 = vpop.f32.mrb[1].mxu0 }
 0x141   :  { %v1302_v60 = vpop.f32.mrb[1].mxu1  ;;  %v1281_v61 = vadd.f32 %v1280_v59, %v1279_v56  ;;  %v1282_v63 = vpop.f32.mrb[2].mxu0 }
 0x142   :  { %v1303_v62 = vadd.f32 %v1302_v60, %v1301_v57  ;;  %v1304_v0 = vpop.f32.mrb[2].mxu1  ;;  %v1283_v1 = vpop.f32.mrb[3].mxu0 }
 0x143   :  { %v1305_v2 = vpop.f32.mrb[3].mxu1  ;;  %v530_v3 = vadd.f32 %v1281_v61, %v1165_v58 }
 0x145   :  { %v570_v4 = vadd.f32 %v1303_v62, %v530_v3 }
 0x15f   :  { %v1323_v5 = vpop.f32.mrb[4].mxu0 }
 0x160   :  { %v1345_v6 = vpop.f32.mrb[4].mxu1  ;;  %v1324_v7 = vpop.f32.mrb[5].mxu0 }
 0x161   :  { %v1325_v8 = vadd.f32 %v1324_v7, %v1323_v5  ;;  %v1346_v9 = vpop.f32.mrb[5].mxu1  ;;  %v1326_v10 = vpop.f32.mrb[6].mxu0 }
 0x162   :  { %v1347_v11 = vadd.f32 %v1346_v9, %v1345_v6  ;;  %v1348_v12 = vpop.f32.mrb[6].mxu1  ;;  %v1327_v13 = vpop.f32.mrb[7].mxu0 }
 0x163   :  { %v610_v14 = vadd.f32 %v1325_v8, %v570_v4  ;;  %v1349_v15 = vpop.f32.mrb[7].mxu1 }
 0x165   :  { %1126 = vst [vmem:[#allocation10] sm:$0xff] %v610_v14 }
 0x166   :  { %1598 = shalt.err (!%p1595_p8)
}
 0x167   :  { %s1599_s13 = scalar_lea.hbm %s1781_s6, 128 }
 0x168   :  { %p1600_p9 = scmp.ne.s32.totalorder %s1781_s6, %s1599_s13  ;;  %p1603_p10 = scmp.lt.u32.totalorder %s1599_s13, %s1781_s6 }
 0x16a   :  { %p1605_p11 = pnand %p1603_p10, %p1600_p9 }
 0x16c   :  { %1608 = shalt.err (!%p1605_p11)
}
 0x16d   :  { %1139 = dma.vmem_to_hbm [thread:$0]  %s1137_s10, 128, %s1781_s6, [#allocation4]   ;;  %v1214_v16 = vld [vmem:[%s1780_s5] ss:$0 sm:$0xff] }
 0x16e   :  { %v1041_v20 = vadd.f32 %v1347_v11, %v1214_v16  ;;  %s1648_s20 = smov [#allocation11]  }
 0x16f   :  { %s1146_s21 = sshll.u32 %s1648_s20, 4  ;;  %s1147_s21 = int_to_ptr.vmem [resolvable:$true] %s1146_s21 }
 0x170   :  { %s1609_s6 = scalar_lea.vmem %s1147_s21, 128  ;;  %p1614_p13 = scmp.lt.s32.totalorder %s1147_s21, %s1147_s21 }
 0x171   :  { %p1610_p12 = scmp.ne.s32.totalorder %s1147_s21, %s1609_s6  ;;  %p1615_p0 = scmp.lt.s32.totalorder %s1609_s6, %s1609_s6 }
 0x173   :  { %p1616_p1 = por %p1615_p0, %p1614_p13 }
 0x175   :  { %p1617_p2 = pnand %p1616_p1, %p1610_p12 }
 0x17f   :  { %v1367_v17 = vpop.f32.mrb[8].mxu0 }
 0x180   :  { %v1389_v18 = vpop.f32.mrb[8].mxu1  ;;  %v1368_v19 = vpop.f32.mrb[9].mxu0 }
 0x181   :  { %v1369_v21 = vadd.f32 %v1368_v19, %v1367_v17  ;;  %v1390_v22 = vpop.f32.mrb[9].mxu1  ;;  %v1370_v23 = vpop.f32.mrb[10].mxu0 }
 0x182   :  { %v1391_v24 = vadd.f32 %v1390_v22, %v1389_v18  ;;  %v1392_v25 = vpop.f32.mrb[10].mxu1  ;;  %v1371_v26 = vpop.f32.mrb[11].mxu0 }
 0x183   :  { %v1081_v27 = vadd.f32 %v1369_v21, %v1041_v20  ;;  %v1393_v28 = vpop.f32.mrb[11].mxu1 }
 0x185   :  { %v1121_v29 = vadd.f32 %v1391_v24, %v1081_v27 }
 0x187   :  { %v1128_v30 = vmul.f32 %v1121_v29, %v610_v14  ;;  %1127 = vst [vmem:[#allocation11] sm:$0xff] %v1121_v29 }
 0x188   :  { %1620 = shalt.err (!%p1617_p2)
}
 0x189   :  { %s1621_s23 = scalar_lea.hbm %s1782_s7, 128 }
 0x18a   :  { %p1622_p3 = scmp.ne.s32.totalorder %s1782_s7, %s1621_s23  ;;  %p1625_p4 = scmp.lt.u32.totalorder %s1621_s23, %s1782_s7 }
 0x18c   :  { %p1627_p5 = pnand %p1625_p4, %p1622_p3 }
 0x18e   :  { %1630 = shalt.err (!%p1627_p5)
}
 0x18f   :  { %1149 = dma.vmem_to_hbm [thread:$0]  %s1147_s21, 128, %s1782_s7, [#allocation12]   ;;  %1129 = vst [vmem:[%s1783_s8] sm:$0xff] %v1128_v30 }
 0x190   :  { %1637 = dma.done.wait [#allocation4], 128  }
 0x191   :  { %1638 = vsyncadd [#allocation4], 4294967168 }
 0x192   :  { %1639 = dma.done.wait [#allocation12], 128  }
 0x193   :  { %1640 = vsyncadd [#allocation12], 4294967168 }
 0x194   :  { %1160 = vsyncpa [#allocation3], 1 }
 0x195   :  { %1161 = vsyncpa [#allocation6], 1 }
 0x196   :  { %1162 = vsyncpa [#allocation9], 1 }
 0x197   :  { %1163 = vsyncpa [#allocation4], 1 }
 0x198   :  { %1164 = vsyncpa [#allocation12], 1 }

</bundles_post_ra>
